<compile_context>
chip_gen: v7x
topology: tpu7x:2x2x1
jax: 0.10.0
libtpu: 0.0.40
codegen_flags: <defaults>
</compile_context>

<pallas_src>
import jax
import jax.numpy as jnp
from jax.experimental import pallas as pl
from jax.experimental.pallas import tpu as pltpu


MARGIN = 1.0


def _transh_kernel(idx_ref, tbl_ref, out_ref):
    """idx_ref: (8B, 1) int32 row ids into the concatenated table, in order
         [h_pos; h_neg; t_pos; t_neg; r_pos; r_neg; wr_pos; wr_neg]
       (relation / wr ids already offset by Ne / Ne+Nr host-side).
       tbl_ref: (Ne + 2*Nr, D) f32 = concat([e, r, wr]).
       out_ref: (1, 1) f32 scalar hinge loss in SMEM."""
    idx = idx_ref[...]                                  # (8B, 1) int32
    n_rows = tbl_ref.shape[0]
    kB = idx.shape[0]
    B = kB // 8

    # Single one-hot gather matmul on the MXU: (8B, N) @ (N, D) -> (8B, D).
    lanes = jax.lax.broadcasted_iota(jnp.int32, (kB, n_rows), 1)
    one_hot = (idx == lanes).astype(jnp.float32)
    emb = jnp.dot(one_hot, tbl_ref[...], preferred_element_type=jnp.float32)

    # max_norm=1 renorm applied once to the whole gathered slab.
    nrm2 = jnp.sum(emb * emb, axis=1, keepdims=True)    # (8B, 1)
    inv = jax.lax.rsqrt(jnp.maximum(nrm2, 1.0))         # clamp: no inf under the where
    emb = emb * jnp.where(nrm2 > 1.0, inv, 1.0)

    h = emb[0 * B:2 * B]                                # (2B, D): [h_pos; h_neg]
    t = emb[2 * B:4 * B]                                # (2B, D): [t_pos; t_neg]
    rel = emb[4 * B:6 * B]                              # (2B, D): [r_pos; r_neg]
    wr = emb[6 * B:8 * B]                               # (2B, D): [wr_pos; wr_neg]

    # Htransfer(h, wr) + r - Htransfer(t, wr) == (h - t) - sum((h - t)*wr)*wr + r
    d = h - t
    proj = jnp.sum(d * wr, axis=1, keepdims=True)       # (2B, 1)
    score = d - proj * wr + rel                         # (2B, D)
    y = jnp.sqrt(jnp.sum(score * score, axis=1, keepdims=True))   # (2B, 1)

    dis = y[0:B] - y[B:2 * B] + MARGIN                  # (B, 1) = y_pos - y_neg + margin
    out_ref[0, 0] = jnp.sum(jnp.maximum(dis, 0.0))


def transh_loss_pallas(e_emb, r_emb, wr_emb, x_pos, x_neg):
    """x_pos / x_neg are tuples (h_idx, r_idx, t_idx), each int32 [B]."""
    h_p, r_p, t_p = x_pos
    h_n, r_n, t_n = x_neg
    n_ent = e_emb.shape[0]
    n_rel = r_emb.shape[0]
    dim = e_emb.shape[1]
    B = h_p.shape[0]

    # One concatenated table; relation / wr indices pre-offset host-side.
    table = jnp.concatenate([e_emb, r_emb, wr_emb], axis=0)          # (Ne+2Nr, D)
    off_r = n_ent
    off_w = n_ent + n_rel
    idx = jnp.concatenate([
        h_p, h_n,                                                     # h rows
        t_p, t_n,                                                     # t rows
        r_p + off_r, r_n + off_r,                                     # r rows
        r_p + off_w, r_n + off_w,                                     # wr rows
    ]).astype(jnp.int32).reshape(8 * B, 1)

    n_rows = table.shape[0]
    cost = pl.CostEstimate(
        flops=2 * (8 * B) * n_rows * dim + 16 * (8 * B) * dim,        # gather matmul + vector work
        transcendentals=8 * B + 2 * B,                                # rsqrt + sqrt rows
        bytes_accessed=table.size * 4 + idx.size * 4 + 4,
    )

    vmem = pl.BlockSpec(memory_space=pltpu.MemorySpace.VMEM)
    out = pl.pallas_call(
        _transh_kernel,
        out_shape=jax.ShapeDtypeStruct((1, 1), jnp.float32),
        in_specs=[vmem, vmem],
        out_specs=pl.BlockSpec(memory_space=pltpu.MemorySpace.SMEM),
        cost_estimate=cost,
    )(idx, table)
    return out[0, 0]


def transh_loss_ref(e_emb, r_emb, wr_emb, x_pos, x_neg):
    """Pure-JAX reference mirroring the PyTorch module's forward pass."""
    def clip(e):
        nrm = jnp.linalg.norm(e, axis=1, keepdims=True)
        return e * jnp.where(nrm > 1.0, 1.0 / nrm, 1.0)

    def htransfer(e, wr):
        return e - jnp.sum(e * wr, axis=1, keepdims=True) * wr

    def predict(x):
        h_i, r_i, t_i = x
        h = clip(jnp.take(e_emb, h_i, axis=0))
        r = clip(jnp.take(r_emb, r_i, axis=0))
        t = clip(jnp.take(e_emb, t_i, axis=0))
        wr = clip(jnp.take(wr_emb, r_i, axis=0))
        score = htransfer(h, wr) + r - htransfer(t, wr)
        return jnp.sqrt(jnp.sum(score ** 2, axis=1))

    y_pos = predict(x_pos)
    y_neg = predict(x_neg)
    return jnp.sum(jax.nn.relu(y_pos - y_neg + MARGIN))


if __name__ == "__main__":
    n_entitys, n_relations, dim, batch = 50, 10, 32, 8

    key = jax.random.PRNGKey(0)
    k_e, k_r, k_wr, k1, k2, k3, k4, k5, k6 = jax.random.split(key, 9)

    # nn.Embedding default init: N(0, 1)
    e_emb = jax.random.normal(k_e, (n_entitys, dim), dtype=jnp.float32)
    r_emb = jax.random.normal(k_r, (n_relations, dim), dtype=jnp.float32)
    wr_emb = jax.random.normal(k_wr, (n_relations, dim), dtype=jnp.float32)

    h_pos = jax.random.randint(k1, (batch,), 0, n_entitys, dtype=jnp.int32)
    r_pos = jax.random.randint(k2, (batch,), 0, n_relations, dtype=jnp.int32)
    t_pos = jax.random.randint(k3, (batch,), 0, n_entitys, dtype=jnp.int32)
    h_neg = jax.random.randint(k4, (batch,), 0, n_entitys, dtype=jnp.int32)
    r_neg = jax.random.randint(k5, (batch,), 0, n_relations, dtype=jnp.int32)
    t_neg = jax.random.randint(k6, (batch,), 0, n_entitys, dtype=jnp.int32)

    x_pos = (h_pos, r_pos, t_pos)
    x_neg = (h_neg, r_neg, t_neg)

    loss = transh_loss_pallas(e_emb, r_emb, wr_emb, x_pos, x_neg)
    loss = jax.block_until_ready(loss)

    ref = jax.block_until_ready(transh_loss_ref(e_emb, r_emb, wr_emb, x_pos, x_neg))
    assert jnp.allclose(loss, ref, rtol=1e-4, atol=1e-4), (loss, ref)

    print("KERNEL_OK")
</pallas_src>

<mosaic_0001>
module attributes {stable_mosaic.version = 11 : i64} {
  func.func @_transh_kernel(%arg0: memref<64x1xi32, #tpu.memory_space<vmem>>, %arg1: memref<70x32xf32, #tpu.memory_space<vmem>>, %arg2: memref<1x1xf32, #tpu.memory_space<smem>>) attributes {dimension_semantics = [], scalar_prefetch = 0 : i64, scratch_operands = 0 : i64, tpu.core_type = #tpu.core_type<tc>} {
    %c0 = arith.constant 0 : index
    %c0_0 = arith.constant 0 : index
    %0 = vector.load %arg0[%c0, %c0_0] : memref<64x1xi32, #tpu.memory_space<vmem>>, vector<64x1xi32>
    %1 = tpu.iota {dimensions = array<i32: 1>} : vector<64x70xi32>
    %2 = vector.broadcast %0 : vector<64x1xi32> to vector<64x70xi32>
    %3 = arith.cmpi eq, %2, %1 : vector<64x70xi32>
    %4 = arith.extui %3 : vector<64x70xi1> to vector<64x70xi32>
    %5 = arith.sitofp %4 : vector<64x70xi32> to vector<64x70xf32>
    %c0_1 = arith.constant 0 : index
    %c0_2 = arith.constant 0 : index
    %6 = vector.load %arg1[%c0_1, %c0_2] : memref<70x32xf32, #tpu.memory_space<vmem>>, vector<70x32xf32>
    %cst = arith.constant dense<0.000000e+00> : vector<64x32xf32>
    %7 = tpu.matmul %5, %6, %cst {dimension_numbers = #tpu.dot_dimension_numbers<[1], [0], [0], [1], [0, 0, 1, 1], [], []>} : vector<64x70xf32>, vector<70x32xf32>, vector<64x32xf32> -> vector<64x32xf32>
    %8 = arith.mulf %7, %7 : vector<64x32xf32>
    %cst_3 = arith.constant dense<0.000000e+00> : vector<64xf32>
    %9 = vector.multi_reduction <add>, %8, %cst_3 [1] : vector<64x32xf32> to vector<64xf32>
    %10 = vector.shape_cast %9 : vector<64xf32> to vector<64x1xf32>
    %cst_4 = arith.constant 1.000000e+00 : f32
    %11 = vector.broadcast %cst_4 : f32 to vector<64x1xf32>
    %12 = arith.maximumf %10, %11 : vector<64x1xf32>
    %13 = math.rsqrt %12 : vector<64x1xf32>
    %cst_5 = arith.constant 1.000000e+00 : f32
    %14 = vector.broadcast %cst_5 : f32 to vector<64x1xf32>
    %15 = arith.cmpf ogt, %10, %14 : vector<64x1xf32>
    %cst_6 = arith.constant 1.000000e+00 : f32
    %16 = vector.broadcast %cst_6 : f32 to vector<64x1xf32>
    %17 = arith.select %15, %13, %16 : vector<64x1xi1>, vector<64x1xf32>
    %18 = vector.broadcast %17 : vector<64x1xf32> to vector<64x32xf32>
    %19 = arith.mulf %7, %18 : vector<64x32xf32>
    %20 = vector.extract_strided_slice %19 {offsets = [0, 0], sizes = [16, 32], strides = [1, 1]} : vector<64x32xf32> to vector<16x32xf32>
    %21 = vector.extract_strided_slice %19 {offsets = [16, 0], sizes = [16, 32], strides = [1, 1]} : vector<64x32xf32> to vector<16x32xf32>
    %22 = vector.extract_strided_slice %19 {offsets = [32, 0], sizes = [16, 32], strides = [1, 1]} : vector<64x32xf32> to vector<16x32xf32>
    %23 = vector.extract_strided_slice %19 {offsets = [48, 0], sizes = [16, 32], strides = [1, 1]} : vector<64x32xf32> to vector<16x32xf32>
    %24 = arith.subf %20, %21 : vector<16x32xf32>
    %25 = arith.mulf %24, %23 : vector<16x32xf32>
    %cst_7 = arith.constant dense<0.000000e+00> : vector<16xf32>
    %26 = vector.multi_reduction <add>, %25, %cst_7 [1] : vector<16x32xf32> to vector<16xf32>
    %27 = vector.shape_cast %26 : vector<16xf32> to vector<16x1xf32>
    %28 = vector.broadcast %27 : vector<16x1xf32> to vector<16x32xf32>
    %29 = arith.mulf %28, %23 : vector<16x32xf32>
    %30 = arith.subf %24, %29 : vector<16x32xf32>
    %31 = arith.addf %30, %22 : vector<16x32xf32>
    %32 = arith.mulf %31, %31 : vector<16x32xf32>
    %cst_8 = arith.constant dense<0.000000e+00> : vector<16xf32>
    %33 = vector.multi_reduction <add>, %32, %cst_8 [1] : vector<16x32xf32> to vector<16xf32>
    %34 = vector.shape_cast %33 : vector<16xf32> to vector<16x1xf32>
    %35 = math.sqrt %34 : vector<16x1xf32>
    %36 = vector.extract_strided_slice %35 {offsets = [0, 0], sizes = [8, 1], strides = [1, 1]} : vector<16x1xf32> to vector<8x1xf32>
    %37 = vector.extract_strided_slice %35 {offsets = [8, 0], sizes = [8, 1], strides = [1, 1]} : vector<16x1xf32> to vector<8x1xf32>
    %38 = arith.subf %36, %37 : vector<8x1xf32>
    %cst_9 = arith.constant 1.000000e+00 : f32
    %39 = vector.broadcast %cst_9 : f32 to vector<8x1xf32>
    %40 = arith.addf %38, %39 : vector<8x1xf32>
    %cst_10 = arith.constant 0.000000e+00 : f32
    %41 = vector.broadcast %cst_10 : f32 to vector<8x1xf32>
    %42 = arith.maximumf %40, %41 : vector<8x1xf32>
    %43 = vector.shape_cast %42 : vector<8x1xf32> to vector<1x8x1xf32>
    %cst_11 = arith.constant dense<0.000000e+00> : vector<1xf32>
    %44 = vector.multi_reduction <add>, %43, %cst_11 [1, 2] : vector<1x8x1xf32> to vector<1xf32>
    %45 = vector.shape_cast %44 : vector<1xf32> to vector<1x1x1xf32>
    %46 = vector.extract %45[0, 0, 0] : f32 from vector<1x1x1xf32>
    %c0_12 = arith.constant 0 : index
    %c0_13 = arith.constant 0 : index
    %47 = memref.load %arg2[%c0_12, %c0_13] : memref<1x1xf32, #tpu.memory_space<smem>>
    memref.store %46, %arg2[%c0_12, %c0_13] : memref<1x1xf32, #tpu.memory_space<smem>>
    return
  }
}

</mosaic_0001>

<bundles_post_ra>
// kernel: tpu_custom_call.1
= control target key start
LH: loop header
LB: loop body
LE: loop exit
PB: predicated region body
PF: predicated region fallthrough
CT: control target
= control target key end

     0   :  { %v482_v2 = vmov 0   ;;  %s598_s0 = inlined_call_operand.vmem [shape: s32[64,1], index: 0, kind: input, shape index: {}]   ;;  %s599_s1 = inlined_call_operand.vmem [shape: f32[70,32], index: 1, kind: input, shape index: {}]   ;;  %s600_s2 = inlined_call_operand.hbm [shape: f32[1,1], index: 2, kind: output, shape index: {}]  }
   0x1   :  { %v16_v0 = vld [vmem:[%s598_s0 + $0x20] sm:$0xff]  ;;  %449 = vset.pattern.permute.xlu1 %v482_v2  ;;  %448 = vset.pattern.permute.xlu0 %v482_v2  ;;  %v17_v3 = vld [vmem:[%s598_s0 + $0x28] sm:$0xff]  ;;  %v72_v7 = vld [vmem:[%s599_s1 + $0x10] sm:$0xff] }
   0x2   :  { %v12_v1 = vld [vmem:[%s598_s0] sm:$0xff]  ;;  %35 = vperm.xlu1 %449, %v16_v0   ;;  %v13_v4 = vld [vmem:[%s598_s0 + $0x8] sm:$0xff]  ;;  %v73_v8 = vld [vmem:[%s599_s1 + $0x18] sm:$0xff] }
   0x3   :  { %23 = vperm.xlu0 %448, %v12_v1   ;;  %v70_v5 = vld [vmem:[%s599_s1] sm:$0xff]  ;;  %v71_v6 = vld [vmem:[%s599_s1 + $0x8] sm:$0xff]  ;;  %v421_v10 = vpack.c.bf16 %v73_v8, %v72_v7 }
   0x4   :  { %v417_v9 = vpack.c.bf16 %v71_v6, %v70_v5 }
   0x5   :  { %7 = vsyncpa [#allocation3], 0  ;;  %v74_v11 = vld [vmem:[%s599_s1 + $0x20] sm:$0xff]  ;;  %v75_v12 = vld [vmem:[%s599_s1 + $0x28] sm:$0xff]  ;;  %vm104_vm0 = vcmask 1045504   ;;  %v20_v22 = vlaneseq  ;;  %vm79_vm1 = vcmask 572416  }
   0x6   :  { %38 = vperm.xlu1 %449, %v17_v3   ;;  %v15_v13 = vld [vmem:[%s598_s0 + $0x18] sm:$0xff]  ;;  %v14_v14 = vld [vmem:[%s598_s0 + $0x10] sm:$0xff]  ;;  %418 = vmatprep.subr.bf16.mxu0 %v417_v9  ;;  %v425_v15 = vpack.c.bf16 %v75_v12, %v74_v11  ;;  %v78_v21 = vld [vmem:[%s599_s1 + $0x40] sm:$0x3f]  ;;  %v483_v26 = vmov 0.0   ;;  %vm221_vm10 = vcmask 261120  }
   0x7   :  { %26 = vperm.xlu0 %448, %v13_v4   ;;  %433 = vmatprep.subr.bf16.mxu1 %v417_v9  ;;  %v76_v16 = vld [vmem:[%s599_s1 + $0x30] sm:$0xff]  ;;  %v77_v17 = vld [vmem:[%s599_s1 + $0x38] sm:$0xff]  ;;  %v21_v23 = vand.u32 127, %v20_v22  ;;  %s470_s16 = scalar_lea.hbm %s600_s2, 16 }
   0x8   :  { %420 = vmatpush3.bf16.msra.mxu0 %v417_v9  ;;  %438 = vmatpush3.bf16.msra.mxu1 %v417_v9  ;;  %v19_v18 = vld [vmem:[%s598_s0 + $0x38] sm:$0xff]  ;;  %v18_v19 = vld [vmem:[%s598_s0 + $0x30] sm:$0xff]  ;;  %v429_v20 = vpack.c.bf16 %v77_v17, %v76_v16  ;;  %p471_p0 = scmp.ne.s32.totalorder %s600_s2, %s470_s16  ;;  %p474_p1 = scmp.lt.u32.totalorder %s470_s16, %s600_s2 }
   0x9   :  { %422 = vmatprep.subr.bf16.mxu0 %v421_v10  ;;  %434 = vmatprep.subr.bf16.mxu1 %v421_v10 }
   0xa   :  { %32 = vperm.xlu1 %449, %v15_v13   ;;  %p476_p2 = pnand %p474_p1, %p471_p0 }
   0xb   :  { %29 = vperm.xlu0 %448, %v14_v14  }
   0xc   :  { %424 = vmatpush3.bf16.msra.mxu0 %v421_v10  ;;  %439 = vmatpush3.bf16.msra.mxu1 %v421_v10 }
   0xd   :  { %426 = vmatprep.subr.bf16.mxu0 %v425_v15  ;;  %435 = vmatprep.subr.bf16.mxu1 %v425_v15 }
   0xe   :  { %44 = vperm.xlu1 %449, %v19_v18  }
   0xf   :  { %41 = vperm.xlu0 %448, %v18_v19  }
  0x10   :  { %428 = vmatpush3.bf16.msra.mxu0 %v425_v15  ;;  %440 = vmatpush3.bf16.msra.mxu1 %v425_v15 }
  0x11   :  { %430 = vmatprep.subr.bf16.mxu0 %v429_v20  ;;  %436 = vmatprep.subr.bf16.mxu1 %v429_v20 }
  0x14   :  { %432 = vmatpush3.bf16.msra.mxu0 %v429_v20  ;;  %441 = vmatpush3.bf16.msra.mxu1 %v429_v20 }
  0x15   :  { %403 = vmatprep.subr.msk.mxu0 %vm104_vm0, %v78_v21  ;;  %437 = vmatprep.subr.msk.mxu1 %vm104_vm0, %v78_v21 }
  0x18   :  { %404 = vmatpush3.msk.msra.mxu0 %vm104_vm0, %v78_v21  ;;  %442 = vmatpush3.msk.msra.mxu1 %vm104_vm0, %v78_v21 }
  0x81   :  { %v36_v24 = vpop.permute.xlu1 %35 }
  0x82   :  { %v24_v25 = vpop.permute.xlu0 %23  ;;  %vm50_vm2 = vcmp.eq.s32.totalorder %v36_v24, %v21_v23 }
  0x83   :  { %vm46_vm3 = vcmp.eq.s32.totalorder %v24_v25, %v21_v23  ;;  %v357_v28 = vsel %vm50_vm2, 1.0, %v483_v26 }
  0x84   :  { %v353_v27 = vsel %vm46_vm3, 1.0, %v483_v26  ;;  %411 = vmatprep.mubr.msk.f32.mxu1 %vm79_vm1, %v357_v28 }
  0x85   :  { %405 = vmatprep.mubr.msk.f32.mxu0 %vm79_vm1, %v353_v27  ;;  %v39_v29 = vpop.permute.xlu1 %38 }
  0x86   :  { %v27_v30 = vpop.permute.xlu0 %26  ;;  %vm51_vm4 = vcmp.eq.s32.totalorder %v39_v29, %v21_v23 }
  0x87   :  { %vm47_vm5 = vcmp.eq.s32.totalorder %v27_v30, %v21_v23  ;;  %v358_v31 = vsel %vm51_vm4, 1.0, %v483_v26 }
  0x88   :  { %v354_v32 = vsel %vm47_vm5, 1.0, %v483_v26  ;;  %412 = vmatmul.mubr.msk.f32.vlgmr.msra.gmra.mrb[0].mxu1 %vm79_vm1, %v358_v31 }
  0x89   :  { %406 = vmatmul.mubr.msk.f32.vlgmr.msra.gmra.mrb[0].mxu0 %vm79_vm1, %v354_v32  ;;  %v33_v33 = vpop.permute.xlu1 %32 }
  0x8a   :  { %v30_v34 = vpop.permute.xlu0 %29  ;;  %vm49_vm6 = vcmp.eq.s32.totalorder %v33_v33, %v21_v23 }
  0x8b   :  { %vm48_vm7 = vcmp.eq.s32.totalorder %v30_v34, %v21_v23  ;;  %v356_v35 = vsel %vm49_vm6, 1.0, %v483_v26 }
  0x8c   :  { %v355_v36 = vsel %vm48_vm7, 1.0, %v483_v26  ;;  %vm327_vm7 = vcmask 7168  }
  0x8d   :  { %408 = vmatprep.mubr.msk.f32.mxu0 %vm79_vm1, %v355_v36  ;;  %v45_v37 = vpop.permute.xlu1 %44 }
  0x8e   :  { %409 = vmatmul.mubr.msk.f32.gmra.mrb[2].mxu0 %vm79_vm1, %v356_v35  ;;  %v42_v38 = vpop.permute.xlu0 %41  ;;  %vm53_vm8 = vcmp.eq.s32.totalorder %v45_v37, %v21_v23 }
  0x8f   :  { %vm52_vm9 = vcmp.eq.s32.totalorder %v42_v38, %v21_v23  ;;  %v360_v39 = vsel %vm53_vm8, 1.0, %v483_v26 }
  0x90   :  { %v359_v40 = vsel %vm52_vm9, 1.0, %v483_v26 }
  0x91   :  { %414 = vmatprep.mubr.msk.f32.mxu1 %vm79_vm1, %v359_v40 }
  0x92   :  { %415 = vmatmul.mubr.msk.f32.gmra.mrb[2].mxu1 %vm79_vm1, %v360_v39 }
 0x15b   :  { %v559_v42 = vpop.f32.mrb[0].mxu1 }
 0x15c   :  { %v407_v41 = vpop.f32.mrb[0].mxu0  ;;  %v563_v45 = vpop.f32.mrb[1].mxu1  ;;  %v218_v61 = vmul.f32 %v559_v42, %v559_v42 }
 0x15d   :  { %v214_v43 = vmul.f32 %v407_v41, %v407_v41  ;;  %v561_v44 = vpop.f32.mrb[1].mxu0  ;;  %v217_v59 = vmul.f32 %v563_v45, %v563_v45 }
 0x15e   :  { %v213_v46 = vmul.f32 %v561_v44, %v561_v44  ;;  %v237_v0 = vsel %vm221_vm10, %v218_v61, 0.0 }
 0x15f   :  { %v225_v47 = vsel %vm221_vm10, %v214_v43, 0.0  ;;  %v234_v63 = vsel %vm221_vm10, %v217_v59, 0.0 }
 0x160   :  { %226 = vadd.xlane.f32.xlu1 %v225_v47  ;;  %v222_v48 = vsel %vm221_vm10, %v213_v46, 0.0 }
 0x161   :  { %223 = vadd.xlane.f32.xlu0 %v222_v48  ;;  %v410_v49 = vpop.f32.mrb[2].mxu0 }
 0x162   :  { %v216_v50 = vmul.f32 %v410_v49, %v410_v49  ;;  %v184_v51 = vpop.f32.mrb[3].mxu0 }
 0x163   :  { %v215_v52 = vmul.f32 %v184_v51, %v184_v51 }
 0x164   :  { %v231_v53 = vsel %vm221_vm10, %v216_v50, 0.0 }
 0x165   :  { %232 = vadd.xlane.f32.xlu0 %v231_v53  ;;  %v416_v54 = vpop.f32.mrb[2].mxu1  ;;  %v228_v58 = vsel %vm221_vm10, %v215_v52, 0.0 }
 0x166   :  { %v204_v55 = vpop.f32.mrb[3].mxu1  ;;  %v220_v57 = vmul.f32 %v416_v54, %v416_v54 }
 0x167   :  { %v219_v56 = vmul.f32 %v204_v55, %v204_v55 }
 0x168   :  { %v243_v62 = vsel %vm221_vm10, %v220_v57, 0.0 }
 0x169   :  { %229 = vadd.xlane.f32.xlu0 %v228_v58  ;;  %v240_v60 = vsel %vm221_vm10, %v219_v56, 0.0 }
 0x16a   :  { %241 = vadd.xlane.f32.xlu1 %v240_v60 }
 0x16d   :  { %244 = vadd.xlane.f32.xlu0 %v243_v62 }
 0x16e   :  { %235 = vadd.xlane.f32.xlu1 %v234_v63 }
 0x171   :  { %238 = vadd.xlane.f32.xlu0 %v237_v0 }
 0x1ed   :  { %v227_v1 = vpop.xlane.xlu1 %226 }
 0x1ee   :  { %v247_v2 = vmax.f32 %v227_v1, 1.0  ;;  %v224_v3 = vpop.xlane.xlu0 %223  ;;  %vm263_vm11 = vcmp.gt.f32.partialorder %v227_v1, 1.0 }
 0x1ef   :  { %v246_v4 = vmax.f32 %v224_v3, 1.0  ;;  %vm262_vm13 = vcmp.gt.f32.partialorder %v224_v3, 1.0 }
 0x1f0   :  { %450 = vrsqrt.f32 %v247_v2 }
 0x1f1   :  { %452 = vrsqrt.f32 %v246_v4 }
 0x1f2   :  { %v233_v5 = vpop.xlane.xlu0 %232 }
 0x1f3   :  { %v249_v6 = vmax.f32 %v233_v5, 1.0  ;;  %vm265_vm12 = vcmp.gt.f32.partialorder %v233_v5, 1.0 }
 0x1f5   :  { %454 = vrsqrt.f32 %v249_v6 }
 0x1f6   :  { %v230_v7 = vpop.xlane.xlu0 %229 }
 0x1f7   :  { %v248_v8 = vmax.f32 %v230_v7, 1.0  ;;  %v242_v9 = vpop.xlane.xlu1 %241  ;;  %vm264_vm14 = vcmp.gt.f32.partialorder %v230_v7, 1.0 }
 0x1f8   :  { %v252_v10 = vmax.f32 %v242_v9, 1.0  ;;  %vm268_vm15 = vcmp.gt.f32.partialorder %v242_v9, 1.0 }
 0x1f9   :  { %456 = vrsqrt.f32 %v248_v8 }
 0x1fa   :  { %458 = vrsqrt.f32 %v252_v10  ;;  %v245_v11 = vpop.xlane.xlu0 %244  ;;  %v451_v12 = vpop.eup %450 }
 0x1fb   :  { %v253_v13 = vmax.f32 %v245_v11, 1.0  ;;  %v453_v14 = vpop.eup %452  ;;  %v271_v15 = vsel %vm263_vm11, %v451_v12, 1.0  ;;  %vm269_vm0 = vcmp.gt.f32.partialorder %v245_v11, 1.0  ;;  %v236_v37 = vpop.xlane.xlu1 %235 }
 0x1fc   :  { %v279_v18 = vmul.f32 %v407_v41, %v271_v15  ;;  %v270_v20 = vsel %vm262_vm13, %v453_v14, 1.0  ;;  %v250_v39 = vmax.f32 %v236_v37, 1.0  ;;  %vm266_vm1 = vcmp.gt.f32.partialorder %v236_v37, 1.0 }
 0x1fd   :  { %460 = vrsqrt.f32 %v253_v13  ;;  %v278_v25 = vmul.f32 %v270_v20, %v561_v44 }
 0x1fe   :  { %v239_v38 = vpop.xlane.xlu0 %238  ;;  %462 = vrsqrt.f32 %v250_v39 }
 0x1ff   :  { %v455_v16 = vpop.eup %454  ;;  %v251_v40 = vmax.f32 %v239_v38, 1.0  ;;  %vm267_vm2 = vcmp.gt.f32.partialorder %v239_v38, 1.0 }
 0x200   :  { %v273_v17 = vsel %vm265_vm12, %v455_v16, 1.0 }
 0x201   :  { %v281_v19 = vmul.f32 %v410_v49, %v273_v17  ;;  %464 = vrsqrt.f32 %v251_v40 }
 0x203   :  { %v457_v21 = vpop.eup %456  ;;  %v287_v22 = vsub.f32 %v279_v18, %v281_v19 }
 0x204   :  { %v459_v23 = vpop.eup %458  ;;  %v272_v24 = vsel %vm264_vm14, %v457_v21, 1.0 }
 0x205   :  { %v280_v26 = vmul.f32 %v272_v24, %v184_v51  ;;  %v276_v27 = vsel %vm268_vm15, %v459_v23, 1.0 }
 0x206   :  { %v284_v28 = vmul.f32 %v276_v27, %v204_v55 }
 0x207   :  { %v461_v29 = vpop.eup %460  ;;  %v286_v30 = vsub.f32 %v278_v25, %v280_v26 }
 0x208   :  { %v277_v31 = vsel %vm269_vm0, %v461_v29, 1.0  ;;  %v463_v41 = vpop.eup %462 }
 0x209   :  { %v285_v32 = vmul.f32 %v416_v54, %v277_v31  ;;  %v288_v33 = vmul.f32 %v286_v30, %v284_v28  ;;  %v274_v44 = vsel %vm266_vm1, %v463_v41, 1.0 }
 0x20a   :  { %v282_v50 = vmul.f32 %v274_v44, %v563_v45 }
 0x20b   :  { %v290_v34 = vsel %vm221_vm10, %v288_v33, 0.0  ;;  %v289_v35 = vmul.f32 %v287_v22, %v285_v32  ;;  %v465_v43 = vpop.eup %464 }
 0x20c   :  { %291 = vadd.xlane.f32.xlu1 %v290_v34  ;;  %v275_v48 = vsel %vm267_vm2, %v465_v43, 1.0 }
 0x20d   :  { %v293_v36 = vsel %vm221_vm10, %v289_v35, 0.0  ;;  %v283_v53 = vmul.f32 %v559_v42, %v275_v48 }
 0x20e   :  { %294 = vadd.xlane.f32.xlu0 %v293_v36 }
 0x299   :  { %v292_v46 = vpop.xlane.xlu1 %291 }
 0x29a   :  { %v296_v47 = vmul.f32 %v292_v46, %v284_v28 }
 0x29b   :  { %v295_v49 = vpop.xlane.xlu0 %294 }
 0x29c   :  { %v298_v51 = vsub.f32 %v286_v30, %v296_v47  ;;  %v297_v52 = vmul.f32 %v295_v49, %v285_v32 }
 0x29e   :  { %v299_v54 = vsub.f32 %v287_v22, %v297_v52  ;;  %v300_v55 = vadd.f32 %v298_v51, %v282_v50 }
 0x2a0   :  { %v302_v56 = vmul.f32 %v300_v55, %v300_v55  ;;  %v301_v57 = vadd.f32 %v299_v54, %v283_v53 }
 0x2a2   :  { %v304_v58 = vsel %vm221_vm10, %v302_v56, 0.0  ;;  %v303_v59 = vmul.f32 %v301_v57, %v301_v57 }
 0x2a3   :  { %305 = vadd.xlane.f32.xlu1 %v304_v58 }
 0x2a4   :  { %v307_v60 = vsel %vm221_vm10, %v303_v59, 0.0 }
 0x2a5   :  { %308 = vadd.xlane.f32.xlu0 %v307_v60 }
 0x330   :  { %v306_v61 = vpop.xlane.xlu1 %305 }
 0x331   :  { %466 = vrsqrt.f32 %v306_v61  ;;  %vm312_vm3 = vcmp.eq.f32.partialorder %v306_v61, inf  ;;  %v315_v3 = vand.u32 2147483648, %v306_v61  ;;  %vm314_vm5 = vcmp.eq.f32.partialorder %v306_v61, 0.0 }
 0x332   :  { %v309_v62 = vpop.xlane.xlu0 %308 }
 0x333   :  { %468 = vrsqrt.f32 %v309_v62  ;;  %vm319_vm4 = vcmp.eq.f32.partialorder %v309_v62, inf  ;;  %v322_v2 = vand.u32 2147483648, %v309_v62  ;;  %vm321_vm6 = vcmp.eq.f32.partialorder %v309_v62, 0.0 }
 0x33b   :  { %v467_v45 = vpop.eup %466 }
 0x33c   :  { %v311_v63 = vmul.f32 %v467_v45, %v306_v61 }
 0x33d   :  { %v469_v0 = vpop.eup %468 }
 0x33e   :  { %v318_v42 = vmul.f32 %v469_v0, %v309_v62  ;;  %v313_v1 = vsel %vm312_vm3, %v306_v61, %v311_v63 }
 0x33f   :  { %v316_v5 = vsel %vm314_vm5, %v315_v3, %v313_v1 }
 0x340   :  { %v320_v4 = vsel %vm319_vm4, %v309_v62, %v318_v42 }
 0x341   :  { %v323_v6 = vsel %vm321_vm6, %v322_v2, %v320_v4 }
 0x342   :  { %v324_v7 = vsub.f32 %v316_v5, %v323_v6 }
 0x344   :  { %v325_v8 = vadd.f32 1.0, %v324_v7 }
 0x346   :  { %v326_v9 = vmax.f32 %v325_v8, 0.0 }
 0x348   :  { %v328_v10 = vsel %vm327_vm7, %v326_v9, 0.0 }
 0x349   :  { %329 = vadd.xlane.f32.xlu1 %v328_v10 }
 0x3d6   :  { %v330_v11 = vpop.xlane.xlu1 %329 }
 0x3d7   :  { %v331_v12 = vrot.slane %v330_v11, 4 }
 0x3d9   :  { %v332_v13 = vadd.f32 %v331_v12, %v330_v11 }
 0x3db   :  { %v333_v14 = vrot.slane %v332_v13, 2 }
 0x3dd   :  { %v334_v15 = vadd.f32 %v333_v14, %v332_v13 }
 0x3df   :  { %v335_v16 = vrot.slane %v334_v15, 1 }
 0x3e1   :  { %v336_v17 = vadd.f32 %v335_v16, %v334_v15 }
 0x3e3   :  { %443 = vpush %v336_v17 }
 0x414   :  { %s444_s0 = spop %443 }
 0x415   :  { %339 = sst [smem:[#allocation2]] %s444_s0 }
 0x416   :  { %479 = shalt.err (!%p476_p2)
}
 0x417   :  { %s484_s21 = smov [#allocation2]  }
 0x418   :  { %347 = dma.smem_to_hbm %s484_s21, 16, %s600_s2, [#allocation3]  }
 0x419   :  { %480 = dma.done.wait [#allocation3], 16  }
 0x41a   :  { %481 = vsyncadd [#allocation3], 4294967280 }
 0x41b   :  { %351 = sfence }
 0x41c   :  { %352 = vsyncpa [#allocation3], 1 }

</bundles_post_ra>
